<compile_context>
chip_gen: v7x
topology: tpu7x:2x2x1
jax: 0.10.0
libtpu: 0.0.40
codegen_flags: <defaults>
</compile_context>

<pallas_src>
import jax
import jax.numpy as jnp
from jax.experimental import pallas as pl
from jax.experimental.pallas import tpu as pltpu


def _concat_channels_kernel(x_ref, y_ref, o_ref):
    # x_ref: (1, C1, hw_chunk)  y_ref: (1, C2, hw_chunk)  o_ref: (1, C1+C2, hw_chunk)
    c1 = x_ref.shape[1]
    o_ref[:, :c1, :] = x_ref[...]
    # NOTE: if c1 is not a multiple of the sublane pack (8 for f32) this store
    # is sublane-misaligned (masked/rotated codegen).  Correct, and for this
    # HBM-bound copy it hides under the input/output DMAs.
    o_ref[:, c1:, :] = y_ref[...]


def _pick_hw_chunk(hw: int, c_total: int, itemsize: int, max_block_bytes: int) -> int:
    """Pick a lane-dense (multiple-of-128) chunk of the flattened H*W axis.

    The chunk is sized so the output block is ~max_block_bytes, and chunks are
    near-uniform across the grid (hw / n_steps rounded up to 128).  Returns the
    full extent only when H*W fits in a single chunk (block == full-dim escape
    hatch); ragged final blocks are otherwise left to Pallas edge masking.
    """
    if hw <= 128:
        return hw

    # Largest 128-multiple chunk whose *output* block stays within budget.
    max_chunk = max(128, (max_block_bytes // (c_total * itemsize)) // 128 * 128)

    n_steps = pl.cdiv(hw, max_chunk)
    # Near-uniform steps: ceil(hw / n_steps), rounded up to a 128 multiple.
    chunk = pl.cdiv(pl.cdiv(hw, n_steps), 128) * 128

    if chunk >= hw:
        # Whole extent fits in one (bounded) block.
        return hw
    return chunk


def concat_channels_pallas(
    x: jax.Array,
    y: jax.Array,
    *,
    max_block_bytes: int = 2 * 1024 * 1024,
) -> jax.Array:
    """Concatenate two NCHW tensors along the channel axis with a Pallas kernel."""
    assert x.ndim == 4 and y.ndim == 4
    n, c1, h, w = x.shape
    n2, c2, h2, w2 = y.shape
    assert (n, h, w) == (n2, h2, w2), "batch/spatial dims must match for channel concat"
    assert x.dtype == y.dtype

    hw = h * w
    c_out = c1 + c2
    itemsize = jnp.dtype(x.dtype).itemsize

    # Free, contiguous reshape: put the lane axis at full H*W width.
    x3 = x.reshape(n, c1, hw)
    y3 = y.reshape(n, c2, hw)

    hw_chunk = _pick_hw_chunk(hw, c_out, itemsize, max_block_bytes)
    grid_hw = pl.cdiv(hw, hw_chunk)

    # Per grid step: x + y + out blocks == 2 * c_out * hw_chunk elements.
    # Double-buffered by the Pallas pipeline -> 2x; add 1.5x + 1 MiB headroom
    # for Mosaic scratch; cap under the v7x 64 MiB physical VMEM.
    step_bytes = 2 * c_out * hw_chunk * itemsize
    vmem_limit = int(min(48 * 1024 * 1024,
                         max(4 * 1024 * 1024, 3 * step_bytes + (1 << 20))))

    out3 = pl.pallas_call(
        _concat_channels_kernel,
        out_shape=jax.ShapeDtypeStruct((n, c_out, hw), x.dtype),
        grid_spec=pltpu.PrefetchScalarGridSpec(
            num_scalar_prefetch=0,
            grid=(n, grid_hw),
            in_specs=[
                pl.BlockSpec((1, c1, hw_chunk), lambda b, j: (b, 0, j)),
                pl.BlockSpec((1, c2, hw_chunk), lambda b, j: (b, 0, j)),
            ],
            out_specs=pl.BlockSpec((1, c_out, hw_chunk), lambda b, j: (b, 0, j)),
        ),
        compiler_params=pltpu.CompilerParams(
            # Disjoint output blocks on both axes -> both parallel (megacore).
            dimension_semantics=("parallel", "parallel"),
            vmem_limit_bytes=vmem_limit,
        ),
    )(x3, y3)

    return out3.reshape(n, c_out, h, w)


class Route:
    """JAX/Pallas equivalent of the PyTorch Route module."""

    def __init__(self, from_idx: int, to_idx: int) -> None:
        self.from_idx = from_idx
        self.to_idx = to_idx

    def __call__(self, layer_outputs: list[jax.Array]) -> jax.Array:
        from_layer_output = layer_outputs[self.from_idx]
        if self.to_idx == 0:
            # Pure routing / identity — no compute hot path, just return the tensor.
            return from_layer_output
        to_layer_output = layer_outputs[self.to_idx]
        return concat_channels_pallas(from_layer_output, to_layer_output)


if __name__ == "__main__":
    key = jax.random.PRNGKey(0)
    k0, k1, k2, k3, k4, k5, k6 = jax.random.split(key, 7)

    # Small deterministic "layer outputs" in NCHW.
    layer_outputs = [
        jax.random.normal(k0, (2, 4, 16, 16), dtype=jnp.float32),
        jax.random.normal(k1, (2, 4, 16, 16), dtype=jnp.float32),
        jax.random.normal(k2, (2, 6, 16, 16), dtype=jnp.float32),
    ]

    # Case 1: concat path (to_idx != 0).
    route_concat = Route(from_idx=1, to_idx=2)
    out = jax.block_until_ready(route_concat(layer_outputs))
    ref = jnp.concatenate((layer_outputs[1], layer_outputs[2]), axis=1)
    assert out.shape == ref.shape, (out.shape, ref.shape)
    assert out.dtype == ref.dtype
    assert jnp.array_equal(out, ref), "Pallas channel-concat mismatch vs reference"

    # Case 2: identity path (to_idx == 0).
    route_ident = Route(from_idx=0, to_idx=0)
    out2 = jax.block_until_ready(route_ident(layer_outputs))
    assert jnp.array_equal(out2, layer_outputs[0])

    # Case 3: ragged-tail path — H*W = 13*13 = 169 (not a 128 multiple); force a
    # tiny block budget so the lane axis splits into 128-wide chunks with a
    # masked final block.
    a = jax.random.normal(k3, (2, 8, 13, 13), dtype=jnp.float32)
    b = jax.random.normal(k4, (2, 8, 13, 13), dtype=jnp.float32)
    out3 = jax.block_until_ready(
        concat_channels_pallas(a, b, max_block_bytes=8 * 1024)
    )
    ref3 = jnp.concatenate((a, b), axis=1)
    assert jnp.array_equal(out3, ref3), "Pallas ragged-tail channel-concat mismatch"

    # Case 4: multi-step aligned chunking (H*W = 2048, 8 chunks of 256 lanes).
    c = jax.random.normal(k5, (2, 8, 32, 64), dtype=jnp.float32)
    d = jax.random.normal(k6, (2, 8, 32, 64), dtype=jnp.float32)
    out4 = jax.block_until_ready(
        concat_channels_pallas(c, d, max_block_bytes=16 * 1024)
    )
    ref4 = jnp.concatenate((c, d), axis=1)
    assert jnp.array_equal(out4, ref4), "Pallas chunked channel-concat mismatch"

    print("KERNEL_OK")
</pallas_src>

<mosaic_0001>
module attributes {stable_mosaic.version = 11 : i64} {
  func.func @_concat_channels_kernel(%arg0: i32, %arg1: i32, %arg2: memref<1x4x256xf32, #tpu.memory_space<vmem>>, %arg3: memref<1x6x256xf32, #tpu.memory_space<vmem>>, %arg4: memref<1x10x256xf32, #tpu.memory_space<vmem>>) attributes {dimension_semantics = [#tpu.dimension_semantics<parallel>, #tpu.dimension_semantics<parallel>], iteration_bounds = array<i64: 2, 1>, scalar_prefetch = 0 : i64, scratch_operands = 0 : i64, tpu.core_type = #tpu.core_type<tc>, window_params = [{transform_indices = @transform_0, window_bounds = array<i64: 1, 4, 256>}, {transform_indices = @transform_1, window_bounds = array<i64: 1, 6, 256>}, {transform_indices = @transform_2, window_bounds = array<i64: 1, 10, 256>}]} {
    %c0 = arith.constant 0 : index
    %c0_0 = arith.constant 0 : index
    %c0_1 = arith.constant 0 : index
    %0 = vector.load %arg2[%c0, %c0_0, %c0_1] : memref<1x4x256xf32, #tpu.memory_space<vmem>>, vector<1x4x256xf32>
    %c0_2 = arith.constant 0 : index
    %c0_3 = arith.constant 0 : index
    %c0_4 = arith.constant 0 : index
    %1 = vector.load %arg4[%c0_2, %c0_3, %c0_4] : memref<1x10x256xf32, #tpu.memory_space<vmem>>, vector<1x4x256xf32>
    tpu.vector_store %arg4[%c0_2, %c0_3, %c0_4], %0 {strides = array<i32>} : memref<1x10x256xf32, #tpu.memory_space<vmem>>, vector<1x4x256xf32>,
    %c0_5 = arith.constant 0 : index
    %c0_6 = arith.constant 0 : index
    %c0_7 = arith.constant 0 : index
    %2 = vector.load %arg3[%c0_5, %c0_6, %c0_7] : memref<1x6x256xf32, #tpu.memory_space<vmem>>, vector<1x6x256xf32>
    %c0_8 = arith.constant 0 : index
    %c4 = arith.constant 4 : index
    %c0_9 = arith.constant 0 : index
    %3 = vector.load %arg4[%c0_8, %c4, %c0_9] : memref<1x10x256xf32, #tpu.memory_space<vmem>>, vector<1x6x256xf32>
    tpu.vector_store %arg4[%c0_8, %c4, %c0_9], %2 {strides = array<i32>} : memref<1x10x256xf32, #tpu.memory_space<vmem>>, vector<1x6x256xf32>,
    return
  }
  func.func @transform_0(%arg0: i32, %arg1: i32) -> (i32, i32, i32) {
    %c0_i32 = arith.constant 0 : i32
    %c0_i32_0 = arith.constant 0 : i32
    return %arg0, %c0_i32, %arg1 : i32, i32, i32
  }
  func.func @transform_1(%arg0: i32, %arg1: i32) -> (i32, i32, i32) {
    %c0_i32 = arith.constant 0 : i32
    %c0_i32_0 = arith.constant 0 : i32
    return %arg0, %c0_i32, %arg1 : i32, i32, i32
  }
  func.func @transform_2(%arg0: i32, %arg1: i32) -> (i32, i32, i32) {
    %c0_i32 = arith.constant 0 : i32
    %c0_i32_0 = arith.constant 0 : i32
    return %arg0, %c0_i32, %arg1 : i32, i32, i32
  }
}

</mosaic_0001>

<bundles_post_ra>
// kernel: tpu_custom_call.1
= control target key start
LH: loop header
LB: loop body
LE: loop exit
PB: predicated region body
PF: predicated region fallthrough
CT: control target
= control target key end

     0   :  { %s422_s9 = smov 0   ;;  %s424_s10 = smov 0   ;;  %s455_s0 = inlined_call_operand.vmem [shape: f32[2,4,256], index: 0, kind: input, shape index: {}]   ;;  %s456_s1 = inlined_call_operand.vmem [shape: f32[2,6,256], index: 1, kind: input, shape index: {}]   ;;  %s457_s2 = inlined_call_operand.vmem [shape: f32[2,10,256], index: 2, kind: output, shape index: {}]  }
   0x1   :  { %s426_s11 = smov 0  }
   0x2 LB: > { %s24_s12 = sadd.s32 1, %s401_s10  ;;  %p346_p0 = scmp.ge.s32.totalorder %s405_s11, 1  ;;  %s405_s11 = sphi %s426_s11, %s12_s11   ;;  %s401_s10 = sphi %s424_s10, %s459_s10   ;;  %s397_s9 = sphi %s422_s9, %s458_s9  }
   0x3   : > { %p26_p1 = scmp.ge.s32.totalorder %s24_s12, 2  ;;  %p150_p2 = scmp.lt.s32.totalorder %s405_s11, 3 }
   0x5   : > { %s461_s12 = smov (%p26_p1, %s24_s12), 0  ;;  %p151_p3 = pnand %p346_p0, %p150_p2 }
   0x6   : > { %p190_p4 = scmp.lt.s32.totalorder (!%p151_p3), %s397_s9, 1 }
   0x7   : > { %154 = sbr.rel (%p151_p3) target bundleno = 23 (0x17), region = 28 }
   0xe   : > { %s463_s9 = smov (!%p190_p4, %s397_s9), 1 }
   0xf   : > { %s355_s13 = sshll.u32 %s463_s9, 3  ;;  %s357_s14 = sshll.u32 %s463_s9, 5 }
  0x10   : > { %s197_s17 = scalar_lea.vmem %s455_s0, %s355_s13  ;;  %s217_s20 = scalar_lea.vmem %s457_s2, %s357_s14 }
  0x11   : > { %v219_v0 = vld [vmem:[%s197_s17] sm:$0xff]  ;;  %s356_s21 = sshll.u32 %s463_s9, 4 }
  0x12   : > { %223 = vst [vmem:[%s217_s20] sm:$0xf] %v219_v0  ;;  %v221_v1 = vcombine.high %v219_v0, %v219_v0  ;;  %s207_s24 = scalar_lea.vmem %s456_s1, %s356_s21 }
  0x13   : > { %v225_v2 = vld [vmem:[%s207_s24] sm:$0x3f]  ;;  %v226_v3 = vld [vmem:[%s207_s24 + $0x8] sm:$0x3f] }
  0x14   : > { %224 = vst [vmem:[%s217_s20 + $0x8] sm:$0xf] %v221_v1  ;;  %v229_v4 = vrot.slane %v225_v2, 4  ;;  %v230_v5 = vrot.slane %v226_v3, 4 }
  0x16   : > { %233 = vst [vmem:[%s217_s20 + $0x10] ss:$-12 sps:$4 sm:$0xf3] %v229_v4   ;;  %234 = vst [vmem:[%s217_s20 + $0x18] ss:$-12 sps:$4 sm:$0xf3] %v230_v5  }
  0x17 PF: > { %s12_s11 = sadd.s32 1, %s405_s11   ;;  %s458_s9 = smov %s401_s10 }
  0x18   : > { %p9_p5 = scmp.ge.s32.totalorder %s12_s11, 4   ;;  %s459_s10 = smov %s461_s12 }
  0x1a   :  { %11 = sbr.rel (!%p9_p5) target bundleno = 2 (0x2), region = 61 }

</bundles_post_ra>
